<compile_context>
chip_gen: v5e
topology: v5e:2x2
jax: 0.10.0
libtpu: 0.0.40
codegen_flags: <defaults>
</compile_context>

<pallas_src>
import functools
import math

import jax
import jax.numpy as jnp
from jax.experimental import pallas as pl
from jax.experimental.pallas import tpu as pltpu

LN_EPS = 1e-5
LANE = 128
SUBLANE = 8


def _round_up(x, m):
    return (x + m - 1) // m * m


def _pad_to(a, shape):
    pads = [(0, t - s) for s, t in zip(a.shape, shape)]
    if all(p == (0, 0) for p in pads):
        return a
    return jnp.pad(a, pads)


# --------------------------------------------------------------------------- kernel
def ec_tower_kernel(hid_dim, x_ref, w0_ref, w2_ref, w3_ref, vec_ref, b3_ref, o_ref):
    """Fused (ProteinExpert . fc1) -> LN1 -> ReLU -> fc2 -> LN2 -> ReLU -> fc3."""
    f32 = jnp.float32
    Hp = w0_ref.shape[1]

    x = x_ref[...]
    vecs = vec_ref[...]                                   # (8, Hp) f32, rows: b0,g1,be1,b2,g2,be2,0,0
    b0, g1, be1 = vecs[0:1, :], vecs[1:2, :], vecs[2:3, :]
    b2, g2, be2 = vecs[3:4, :], vecs[4:5, :], vecs[5:6, :]

    # Lane mask over the zero-padded hidden width; LN statistics use the real width.
    lane_mask = (jax.lax.broadcasted_iota(jnp.int32, (1, Hp), 1) < hid_dim).astype(f32)
    inv_n = 1.0 / float(hid_dim)

    def masked_ln(h, g, b):
        # Padded lanes of h are exactly 0, so the plain lane-sum is the real-lane sum.
        mu = jnp.sum(h, axis=-1, keepdims=True) * inv_n
        d = (h - mu) * lane_mask                          # zero padded lanes before var
        var = jnp.sum(d * d, axis=-1, keepdims=True) * inv_n
        # g, b are zero on padded lanes -> padded lanes of the output stay zero.
        return d * jax.lax.rsqrt(var + LN_EPS) * g + b

    def mm(a, w_ref):                                     # MXU matmul, f32 accumulation
        return jnp.dot(a.astype(w_ref.dtype), w_ref[...], preferred_element_type=f32)

    h = mm(x, w0_ref) + b0                                # folded wpe1 -> wpe2 -> fc1
    h = jnp.maximum(masked_ln(h, g1, be1), 0.0)           # ln1, dropout=id, relu
    h = mm(h, w2_ref) + b2                                # fc2
    h = jnp.maximum(masked_ln(h, g2, be2), 0.0)           # ln2, dropout=id, relu
    h = mm(h, w3_ref) + b3_ref[...]                       # fc3
    o_ref[...] = h.astype(o_ref.dtype)


# --------------------------------------------------------------------------- wrapper
def ec_prediction_tower(x, params, *, tile_b=512, matmul_dtype=jnp.float32):
    """x: [B, 128] float32. params: dict of (in,out) weights, (1,out) biases."""
    B, F = x.shape
    assert F == LANE, "module input feature dim is fixed to 128"
    hid_dim = params["w1"].shape[1]
    out_dim = params["w3"].shape[1]
    Hp = _round_up(hid_dim, LANE)
    Op = _round_up(out_dim, LANE)
    f32 = jnp.float32

    # ---- fold the linear chain wpe1 -> wpe2 -> fc1 (no nonlinearity between) ----
    dot_hi = functools.partial(jnp.dot, precision=jax.lax.Precision.HIGHEST)
    w0 = dot_hi(dot_hi(params["wpe1"].astype(f32), params["wpe2"].astype(f32)),
                params["w1"].astype(f32))                                   # (128, hid)
    b0 = dot_hi(dot_hi(params["bpe1"].astype(f32), params["wpe2"].astype(f32))
                + params["bpe2"].astype(f32), params["w1"].astype(f32)) \
         + params["b1"].astype(f32)                                          # (1, hid)

    # ---- zero-pad to lane-dense widths; cast matmul weights (optionally bf16) ----
    w0p = _pad_to(w0, (LANE, Hp)).astype(matmul_dtype)
    w2p = _pad_to(params["w2"].astype(f32), (Hp, Hp)).astype(matmul_dtype)
    w3p = _pad_to(params["w3"].astype(f32), (Hp, Op)).astype(matmul_dtype)
    b3p = _pad_to(params["b3"].astype(f32), (1, Op))

    vecs = jnp.zeros((SUBLANE, Hp), f32)
    for r, v in enumerate([b0, params["g1"], params["beta1"],
                           params["b2"], params["g2"], params["beta2"]]):
        vecs = vecs.at[r, :hid_dim].set(v.astype(f32).reshape(-1))

    # ---- batch tiling: big MXU-sized tiles, >=2 grid steps when possible (v7x) ----
    tile = max(SUBLANE, min(int(tile_b), _round_up(B, SUBLANE)))
    tile = _round_up(tile, SUBLANE)
    if B > SUBLANE and pl.cdiv(B, tile) < 2:
        tile = _round_up(pl.cdiv(B, 2), SUBLANE)
    n_steps = pl.cdiv(B, tile)
    tile = _round_up(pl.cdiv(B, n_steps), SUBLANE)        # balance tiles, minimize padding
    Bp = n_steps * tile
    xp = _pad_to(x, (Bp, LANE))

    weight_args = [w0p, w2p, w3p, vecs, b3p]
    weight_specs = [pl.BlockSpec(w.shape, lambda i: (0, 0)) for w in weight_args]

    # ---- explicit scoped-VMEM budget: double-buffered tiles + replicated weights ----
    wbytes = sum(int(w.size) * w.dtype.itemsize for w in weight_args)
    io_bytes = tile * LANE * x.dtype.itemsize + tile * Op * x.dtype.itemsize
    needed = 2 * (wbytes + io_bytes)
    vmem_limit = int(min(64 << 20, max(16 << 20, 2 * needed + (4 << 20))))

    out = pl.pallas_call(
        functools.partial(ec_tower_kernel, hid_dim),
        out_shape=jax.ShapeDtypeStruct((Bp, Op), x.dtype),
        grid_spec=pltpu.PrefetchScalarGridSpec(
            num_scalar_prefetch=0,
            grid=(n_steps,),
            in_specs=[pl.BlockSpec((tile, LANE), lambda i: (i, 0))] + weight_specs,
            out_specs=pl.BlockSpec((tile, Op), lambda i: (i, 0)),
        ),
        compiler_params=pltpu.CompilerParams(
            dimension_semantics=("parallel",),
            vmem_limit_bytes=vmem_limit,
        ),
    )(xp, *weight_args)

    return out[:B, :out_dim]


# --------------------------------------------------------------------------- params / reference
def init_params(key, hid_dim, out_dim):
    """Deterministic init mimicking PyTorch nn.Linear / nn.LayerNorm defaults.

    Weights stored as (in, out) (transposed vs torch's (out, in)); biases / LN
    params stored as (1, dim).
    """
    def linear(key, fan_in, fan_out):
        k1, k2 = jax.random.split(key)
        bound = 1.0 / math.sqrt(fan_in)
        w = jax.random.uniform(k1, (fan_in, fan_out), jnp.float32, -bound, bound)
        b = jax.random.uniform(k2, (1, fan_out), jnp.float32, -bound, bound)
        return w, b

    keys = jax.random.split(key, 5)
    p = {}
    p["wpe1"], p["bpe1"] = linear(keys[0], 128, 128)      # ProteinExpert fc1
    p["wpe2"], p["bpe2"] = linear(keys[1], 128, 128)      # ProteinExpert fc2
    p["w1"], p["b1"] = linear(keys[2], 128, hid_dim)      # tower fc1
    p["g1"] = jnp.ones((1, hid_dim), jnp.float32)
    p["beta1"] = jnp.zeros((1, hid_dim), jnp.float32)
    p["w2"], p["b2"] = linear(keys[3], hid_dim, hid_dim)  # tower fc2
    p["g2"] = jnp.ones((1, hid_dim), jnp.float32)
    p["beta2"] = jnp.zeros((1, hid_dim), jnp.float32)
    p["w3"], p["b3"] = linear(keys[4], hid_dim, out_dim)  # tower fc3
    return p


def reference_forward(x, p):
    """Pure-JAX reference of the PyTorch forward (eval mode), unfused."""
    dot_hi = functools.partial(jnp.dot, precision=jax.lax.Precision.HIGHEST)

    def ln(h, g, b):
        mu = jnp.mean(h, axis=-1, keepdims=True)
        var = jnp.mean((h - mu) ** 2, axis=-1, keepdims=True)
        return (h - mu) * jax.lax.rsqrt(var + LN_EPS) * g + b

    h = dot_hi(x, p["wpe1"]) + p["bpe1"]
    h = dot_hi(h, p["wpe2"]) + p["bpe2"]
    h = jnp.maximum(ln(dot_hi(h, p["w1"]) + p["b1"], p["g1"], p["beta1"]), 0.0)
    h = jnp.maximum(ln(dot_hi(h, p["w2"]) + p["b2"], p["g2"], p["beta2"]), 0.0)
    return dot_hi(h, p["w3"]) + p["b3"]


if __name__ == "__main__":
    key = jax.random.PRNGKey(0)
    k_x, k_p = jax.random.split(key)

    B, F = 16, 128          # input feature dim fixed to 128 by the module
    hid_dim, out_dim = 32, 8

    x = jax.random.normal(k_x, (B, F), jnp.float32)
    params = init_params(k_p, hid_dim, out_dim)
    ref = reference_forward(x, params)

    # f32 MXU operands: tight check against the unfused reference.
    out_f32 = jax.block_until_ready(
        ec_prediction_tower(x, params, tile_b=512, matmul_dtype=jnp.float32))
    assert out_f32.shape == (B, out_dim)
    assert jnp.allclose(out_f32, ref, atol=2e-4, rtol=2e-4)

    # bf16 MXU operands (v6e/v7x fast path); f32 accumulation + f32 LayerNorm.
    out_bf16 = jax.block_until_ready(
        ec_prediction_tower(x, params, tile_b=512, matmul_dtype=jnp.bfloat16))
    assert out_bf16.shape == (B, out_dim)
    assert bool(jnp.all(jnp.isfinite(out_bf16)))
    assert jnp.allclose(out_bf16, ref, atol=1e-1, rtol=1e-1)

    print("KERNEL_OK")
</pallas_src>

<mosaic_0001>
module attributes {stable_mosaic.version = 11 : i64} {
  func.func @ec_tower_kernel(%arg0: i32, %arg1: memref<8x128xf32, #tpu.memory_space<vmem>>, %arg2: memref<128x128xf32, #tpu.memory_space<vmem>>, %arg3: memref<128x128xf32, #tpu.memory_space<vmem>>, %arg4: memref<128x128xf32, #tpu.memory_space<vmem>>, %arg5: memref<8x128xf32, #tpu.memory_space<vmem>>, %arg6: memref<1x128xf32, #tpu.memory_space<vmem>>, %arg7: memref<8x128xf32, #tpu.memory_space<vmem>>) attributes {dimension_semantics = [#tpu.dimension_semantics<parallel>], iteration_bounds = array<i64: 2>, scalar_prefetch = 0 : i64, scratch_operands = 0 : i64, tpu.core_type = #tpu.core_type<tc>, window_params = [{transform_indices = @transform_0, window_bounds = array<i64: 8, 128>}, {pipeline_mode = #tpu.pipeline_mode<synchronous>, transform_indices = @transform_1, window_bounds = array<i64: 128, 128>}, {pipeline_mode = #tpu.pipeline_mode<synchronous>, transform_indices = @transform_2, window_bounds = array<i64: 128, 128>}, {pipeline_mode = #tpu.pipeline_mode<synchronous>, transform_indices = @transform_3, window_bounds = array<i64: 128, 128>}, {pipeline_mode = #tpu.pipeline_mode<synchronous>, transform_indices = @transform_4, window_bounds = array<i64: 8, 128>}, {pipeline_mode = #tpu.pipeline_mode<synchronous>, transform_indices = @transform_5, window_bounds = array<i64: 1, 128>}, {transform_indices = @transform_6, window_bounds = array<i64: 8, 128>}]} {
    %c0 = arith.constant 0 : index
    %c0_0 = arith.constant 0 : index
    %0 = vector.load %arg1[%c0, %c0_0] : memref<8x128xf32, #tpu.memory_space<vmem>>, vector<8x128xf32>
    %c0_1 = arith.constant 0 : index
    %c0_2 = arith.constant 0 : index
    %1 = vector.load %arg5[%c0_1, %c0_2] : memref<8x128xf32, #tpu.memory_space<vmem>>, vector<8x128xf32>
    %2 = vector.extract_strided_slice %1 {offsets = [0, 0], sizes = [1, 128], strides = [1, 1]} : vector<8x128xf32> to vector<1x128xf32>
    %3 = vector.extract_strided_slice %1 {offsets = [1, 0], sizes = [1, 128], strides = [1, 1]} : vector<8x128xf32> to vector<1x128xf32>
    %4 = vector.extract_strided_slice %1 {offsets = [2, 0], sizes = [1, 128], strides = [1, 1]} : vector<8x128xf32> to vector<1x128xf32>
    %5 = vector.extract_strided_slice %1 {offsets = [3, 0], sizes = [1, 128], strides = [1, 1]} : vector<8x128xf32> to vector<1x128xf32>
    %6 = vector.extract_strided_slice %1 {offsets = [4, 0], sizes = [1, 128], strides = [1, 1]} : vector<8x128xf32> to vector<1x128xf32>
    %7 = vector.extract_strided_slice %1 {offsets = [5, 0], sizes = [1, 128], strides = [1, 1]} : vector<8x128xf32> to vector<1x128xf32>
    %8 = tpu.iota {dimensions = array<i32: 1>} : vector<1x128xi32>
    %c32_i32 = arith.constant 32 : i32
    %9 = vector.broadcast %c32_i32 : i32 to vector<1x128xi32>
    %10 = arith.cmpi slt, %8, %9 : vector<1x128xi32>
    %11 = arith.extui %10 : vector<1x128xi1> to vector<1x128xi32>
    %12 = arith.sitofp %11 : vector<1x128xi32> to vector<1x128xf32>
    %c0_3 = arith.constant 0 : index
    %c0_4 = arith.constant 0 : index
    %13 = vector.load %arg2[%c0_3, %c0_4] : memref<128x128xf32, #tpu.memory_space<vmem>>, vector<128x128xf32>
    %cst = arith.constant dense<0.000000e+00> : vector<8x128xf32>
    %14 = tpu.matmul %0, %13, %cst {dimension_numbers = #tpu.dot_dimension_numbers<[1], [0], [0], [1], [0, 0, 1, 1], [], []>} : vector<8x128xf32>, vector<128x128xf32>, vector<8x128xf32> -> vector<8x128xf32>
    %15 = vector.broadcast %2 : vector<1x128xf32> to vector<8x128xf32>
    %16 = arith.addf %14, %15 : vector<8x128xf32>
    %cst_5 = arith.constant dense<0.000000e+00> : vector<8xf32>
    %17 = vector.multi_reduction <add>, %16, %cst_5 [1] : vector<8x128xf32> to vector<8xf32>
    %18 = vector.shape_cast %17 : vector<8xf32> to vector<8x1xf32>
    %cst_6 = arith.constant 3.125000e-02 : f32
    %19 = vector.broadcast %cst_6 : f32 to vector<8x1xf32>
    %20 = arith.mulf %18, %19 : vector<8x1xf32>
    %21 = vector.broadcast %20 : vector<8x1xf32> to vector<8x128xf32>
    %22 = arith.subf %16, %21 : vector<8x128xf32>
    %23 = vector.broadcast %12 : vector<1x128xf32> to vector<8x128xf32>
    %24 = arith.mulf %22, %23 : vector<8x128xf32>
    %25 = arith.mulf %24, %24 : vector<8x128xf32>
    %cst_7 = arith.constant dense<0.000000e+00> : vector<8xf32>
    %26 = vector.multi_reduction <add>, %25, %cst_7 [1] : vector<8x128xf32> to vector<8xf32>
    %27 = vector.shape_cast %26 : vector<8xf32> to vector<8x1xf32>
    %cst_8 = arith.constant 3.125000e-02 : f32
    %28 = vector.broadcast %cst_8 : f32 to vector<8x1xf32>
    %29 = arith.mulf %27, %28 : vector<8x1xf32>
    %cst_9 = arith.constant 9.99999974E-6 : f32
    %30 = vector.broadcast %cst_9 : f32 to vector<8x1xf32>
    %31 = arith.addf %29, %30 : vector<8x1xf32>
    %32 = math.rsqrt %31 : vector<8x1xf32>
    %33 = vector.broadcast %32 : vector<8x1xf32> to vector<8x128xf32>
    %34 = arith.mulf %24, %33 : vector<8x128xf32>
    %35 = vector.broadcast %3 : vector<1x128xf32> to vector<8x128xf32>
    %36 = arith.mulf %34, %35 : vector<8x128xf32>
    %37 = vector.broadcast %4 : vector<1x128xf32> to vector<8x128xf32>
    %38 = arith.addf %36, %37 : vector<8x128xf32>
    %cst_10 = arith.constant 0.000000e+00 : f32
    %39 = vector.broadcast %cst_10 : f32 to vector<8x128xf32>
    %40 = arith.maximumf %38, %39 : vector<8x128xf32>
    %c0_11 = arith.constant 0 : index
    %c0_12 = arith.constant 0 : index
    %41 = vector.load %arg3[%c0_11, %c0_12] : memref<128x128xf32, #tpu.memory_space<vmem>>, vector<128x128xf32>
    %cst_13 = arith.constant dense<0.000000e+00> : vector<8x128xf32>
    %42 = tpu.matmul %40, %41, %cst_13 {dimension_numbers = #tpu.dot_dimension_numbers<[1], [0], [0], [1], [0, 0, 1, 1], [], []>} : vector<8x128xf32>, vector<128x128xf32>, vector<8x128xf32> -> vector<8x128xf32>
    %43 = vector.broadcast %5 : vector<1x128xf32> to vector<8x128xf32>
    %44 = arith.addf %42, %43 : vector<8x128xf32>
    %cst_14 = arith.constant dense<0.000000e+00> : vector<8xf32>
    %45 = vector.multi_reduction <add>, %44, %cst_14 [1] : vector<8x128xf32> to vector<8xf32>
    %46 = vector.shape_cast %45 : vector<8xf32> to vector<8x1xf32>
    %cst_15 = arith.constant 3.125000e-02 : f32
    %47 = vector.broadcast %cst_15 : f32 to vector<8x1xf32>
    %48 = arith.mulf %46, %47 : vector<8x1xf32>
    %49 = vector.broadcast %48 : vector<8x1xf32> to vector<8x128xf32>
    %50 = arith.subf %44, %49 : vector<8x128xf32>
    %51 = vector.broadcast %12 : vector<1x128xf32> to vector<8x128xf32>
    %52 = arith.mulf %50, %51 : vector<8x128xf32>
    %53 = arith.mulf %52, %52 : vector<8x128xf32>
    %cst_16 = arith.constant dense<0.000000e+00> : vector<8xf32>
    %54 = vector.multi_reduction <add>, %53, %cst_16 [1] : vector<8x128xf32> to vector<8xf32>
    %55 = vector.shape_cast %54 : vector<8xf32> to vector<8x1xf32>
    %cst_17 = arith.constant 3.125000e-02 : f32
    %56 = vector.broadcast %cst_17 : f32 to vector<8x1xf32>
    %57 = arith.mulf %55, %56 : vector<8x1xf32>
    %cst_18 = arith.constant 9.99999974E-6 : f32
    %58 = vector.broadcast %cst_18 : f32 to vector<8x1xf32>
    %59 = arith.addf %57, %58 : vector<8x1xf32>
    %60 = math.rsqrt %59 : vector<8x1xf32>
    %61 = vector.broadcast %60 : vector<8x1xf32> to vector<8x128xf32>
    %62 = arith.mulf %52, %61 : vector<8x128xf32>
    %63 = vector.broadcast %6 : vector<1x128xf32> to vector<8x128xf32>
    %64 = arith.mulf %62, %63 : vector<8x128xf32>
    %65 = vector.broadcast %7 : vector<1x128xf32> to vector<8x128xf32>
    %66 = arith.addf %64, %65 : vector<8x128xf32>
    %cst_19 = arith.constant 0.000000e+00 : f32
    %67 = vector.broadcast %cst_19 : f32 to vector<8x128xf32>
    %68 = arith.maximumf %66, %67 : vector<8x128xf32>
    %c0_20 = arith.constant 0 : index
    %c0_21 = arith.constant 0 : index
    %69 = vector.load %arg4[%c0_20, %c0_21] : memref<128x128xf32, #tpu.memory_space<vmem>>, vector<128x128xf32>
    %cst_22 = arith.constant dense<0.000000e+00> : vector<8x128xf32>
    %70 = tpu.matmul %68, %69, %cst_22 {dimension_numbers = #tpu.dot_dimension_numbers<[1], [0], [0], [1], [0, 0, 1, 1], [], []>} : vector<8x128xf32>, vector<128x128xf32>, vector<8x128xf32> -> vector<8x128xf32>
    %c0_23 = arith.constant 0 : index
    %c0_24 = arith.constant 0 : index
    %71 = vector.load %arg6[%c0_23, %c0_24] : memref<1x128xf32, #tpu.memory_space<vmem>>, vector<1x128xf32>
    %72 = vector.broadcast %71 : vector<1x128xf32> to vector<8x128xf32>
    %73 = arith.addf %70, %72 : vector<8x128xf32>
    %c0_25 = arith.constant 0 : index
    %c0_26 = arith.constant 0 : index
    %74 = vector.load %arg7[%c0_25, %c0_26] : memref<8x128xf32, #tpu.memory_space<vmem>>, vector<8x128xf32>
    tpu.vector_store %arg7[%c0_25, %c0_26], %73 {strides = array<i32>} : memref<8x128xf32, #tpu.memory_space<vmem>>, vector<8x128xf32>,
    return
  }
  func.func @transform_0(%arg0: i32) -> (i32, i32) {
    %c0_i32 = arith.constant 0 : i32
    %c0_i32_0 = arith.constant 0 : i32
    return %arg0, %c0_i32 : i32, i32
  }
  func.func @transform_1(%arg0: i32) -> (i32, i32) {
    %c0_i32 = arith.constant 0 : i32
    %c0_i32_0 = arith.constant 0 : i32
    %c0_i32_1 = arith.constant 0 : i32
    return %c0_i32, %c0_i32_0 : i32, i32
  }
  func.func @transform_2(%arg0: i32) -> (i32, i32) {
    %c0_i32 = arith.constant 0 : i32
    %c0_i32_0 = arith.constant 0 : i32
    %c0_i32_1 = arith.constant 0 : i32
    return %c0_i32, %c0_i32_0 : i32, i32
  }
  func.func @transform_3(%arg0: i32) -> (i32, i32) {
    %c0_i32 = arith.constant 0 : i32
    %c0_i32_0 = arith.constant 0 : i32
    %c0_i32_1 = arith.constant 0 : i32
    return %c0_i32, %c0_i32_0 : i32, i32
  }
  func.func @transform_4(%arg0: i32) -> (i32, i32) {
    %c0_i32 = arith.constant 0 : i32
    %c0_i32_0 = arith.constant 0 : i32
    %c0_i32_1 = arith.constant 0 : i32
    return %c0_i32, %c0_i32_0 : i32, i32
  }
  func.func @transform_5(%arg0: i32) -> (i32, i32) {
    %c0_i32 = arith.constant 0 : i32
    %c0_i32_0 = arith.constant 0 : i32
    %c0_i32_1 = arith.constant 0 : i32
    return %c0_i32, %c0_i32_0 : i32, i32
  }
  func.func @transform_6(%arg0: i32) -> (i32, i32) {
    %c0_i32 = arith.constant 0 : i32
    %c0_i32_0 = arith.constant 0 : i32
    return %arg0, %c0_i32 : i32, i32
  }
}

</mosaic_0001>

<bundles_post_ra>
// kernel: tpu_custom_call.1
= control target key start
LH: loop header
LB: loop body
LE: loop exit
PB: predicated region body
PF: predicated region fallthrough
CT: control target
= control target key end

     0   :  { %s1204_s0 = inlined_call_operand.hbm [shape: f32[16,128], index: 0, kind: input, shape index: {}]   ;;  %s1205_s1 = inlined_call_operand.hbm [shape: f32[128,128], index: 1, kind: input, shape index: {}]   ;;  %s1206_s2 = inlined_call_operand.hbm [shape: f32[128,128], index: 2, kind: input, shape index: {}]   ;;  %s1207_s3 = inlined_call_operand.hbm [shape: f32[128,128], index: 3, kind: input, shape index: {}]   ;;  %s1208_s4 = inlined_call_operand.hbm [shape: f32[8,128], index: 4, kind: input, shape index: {}]   ;;  %s1209_s5 = inlined_call_operand.vmem [shape: f32[1,128], index: 5, kind: input, shape index: {}]   ;;  %s1210_s6 = inlined_call_operand.hbm [shape: f32[16,128], index: 6, kind: output, shape index: {}]  }
   0x1   :  { %1211 = sst [smem:[#allocation16_spill]] %s1205_s1 }
   0x2   :  { %11 = vsyncpa [#allocation3], 0 }
   0x3   :  { %13 = vsyncpa [#allocation3 + $0x1], 0 }
   0x4   :  { %14 = vsyncpa [#allocation6], 0 }
   0x5   :  { %15 = vsyncpa [#allocation9], 0 }
   0x6   :  { %16 = vsyncpa [#allocation4], 0 }
   0x7   :  { %18 = vsyncpa [#allocation4 + $0x1], 0  ;;  %s1015_s21 = smov 0   ;;  %s1017_s22 = smov 0  }
   0x8   :  { %s1019_s23 = smov 0   ;;  %s1021_s24 = smov 0  }
   0x9 LB: > { %s1212_s1 = sld [smem:[#allocation16_spill]]  ;;  %s1039_s28 = sadd.s32 4294967295, %s971_s24   ;;  %s971_s24 = sphi %s1021_s24, %s1224_s24   ;;  %s967_s23 = sphi %s1019_s23, %s1223_s23   ;;  %s963_s22 = sphi %s1017_s22, %s1222_s22   ;;  %s959_s21 = sphi %s1015_s21, %s1221_s21  }
   0xa   : > { %p632_p0 = scmp.ge.s32.totalorder %s971_s24, 1  ;;  %p45_p1 = scmp.eq.s32.totalorder %s1039_s28, 0 }
   0xb   : > { %p186_p2 = scmp.lt.s32.totalorder %s971_s24, 3  ;;  %s973_s30 = smov [#allocation5]  }
   0xc   : > { %s199_s7 = sshll.u32 %s973_s30, 4  ;;  %s225_s10 = sshll.u32 %s1207_s3, 4  ;;  %s200_s7 = int_to_ptr.vmem [resolvable:$true] %s199_s7  ;;  %s226_s10 = int_to_ptr.hbm [resolvable:$true] %s225_s10 }
   0xd   : > { %p1044_p3 = pnand %p632_p0, %p186_p2  ;;  %s211_s14 = sshll.u32 %s1206_s2, 4  ;;  %s212_s14 = int_to_ptr.hbm [resolvable:$true] %s211_s14 }
   0xe   : > { %s974_s15 = smov [#allocation8]   ;;  %s975_s17 = smov 128  }
   0xf   : > { %s197_s27 = sshll.u32 %s1212_s1, 4  ;;  %p672_p4 = pneg %p1044_p3  ;;  %s198_s27 = int_to_ptr.hbm [resolvable:$true] %s197_s27 }
  0x10   : > { %s227_s16 = sshll.u32 %s974_s15, 4  ;;  %s976_s18 = smov 8   ;;  %s228_s16 = int_to_ptr.vmem [resolvable:$true] %s227_s16 }
  0x11   : > { %p1056_p6 = pnand %p672_p4, %p45_p1  ;;  %s240_s25 = sshll.u32 %s1208_s4, 4  ;;  %s241_s25 = int_to_ptr.hbm [resolvable:$true] %s240_s25 }
  0x12   : > { %s977_s26 = smov [#allocation7]   ;;  %s631_s8 = sadd.s32 4294967294, %s971_s24  }
  0x13   : > { %675 = dma.hbm_to_vmem [thread:$0]  (!%p1056_p6), %s198_s27, 2048, %s200_s7, [#allocation6], %s975_s17, %s975_s17, %s976_s18  }
  0x14   : > { %681 = dma.hbm_to_vmem [thread:$0]  (!%p1056_p6), %s226_s10, 2048, %s228_s16, [#allocation9], %s975_s17, %s975_s17, %s976_s18  }
  0x15   : > { %s213_s30 = sshll.u32 %s977_s26, 4  ;;  %s978_s27 = smov [#allocation10]   ;;  %s214_s30 = int_to_ptr.vmem [resolvable:$true] %s213_s30 }
  0x16   : > { %678 = dma.hbm_to_vmem [thread:$0]  (!%p1056_p6), %s212_s14, 2048, %s214_s30, [#allocation6], %s975_s17, %s975_s17, %s976_s18  }
  0x17   : > { %s242_s7 = sshll.u32 %s978_s27, 4  ;;  %s1076_s9 = sadd.s32 1, %s971_s24   ;;  %s243_s7 = int_to_ptr.vmem [resolvable:$true] %s242_s7 }
  0x18   : > { %684 = dma.hbm_to_vmem [thread:$0]  (!%p1056_p6), %s241_s25, 128, %s243_s7, [#allocation9]  }
  0x19   : > { %s28_s10 = ssub.s32 %s971_s24, %s1076_s9  ;;  %s31_s12 = sadd.s32 1, %s967_s23 }
  0x1a   : > { %p29_p7 = scmp.eq.s32.totalorder %s28_s10, 0  ;;  %p38_p8 = scmp.ne.s32.totalorder %s967_s23, %s963_s22 }
  0x1b   : > { %p39_p9 = scmp.eq.s32.totalorder %s971_s24, 0  ;;  %p44_p10 = scmp.ne.s32.totalorder %s963_s22, %s959_s21 }
  0x1c   : > { %s1087_s13 = scalar_select %p29_p7, %s967_s23, %s31_s12  }
  0x1d   : > { %p1089_p11 = por %p39_p9, %p38_p8  ;;  %p1095_p12 = por %p45_p1, %p44_p10 }
  0x1e   : > { %p173_p13 = scmp.eq.s32.totalorder %s1039_s28, 1  ;;  %p179_p0 = scmp.eq.s32.totalorder %s631_s8, 1 }
  0x1f   : > { %p697_p2 = scmp.lt.s32.totalorder %s971_s24, 2  ;;  %s256_s15 = sand.u32 1, %s967_s23  }
  0x20   : > { %p1102_p4 = por %p173_p13, %p38_p8  ;;  %p1106_p6 = por %p179_p0, %p44_p10 }
  0x21   : > { %s638_s18 = sshll.u32 %s256_s15, 3  ;;  %s639_s19 = sshll.u32 %s971_s24, 3 }
  0x22   : > { %s264_s26 = scalar_lea.hbm %s1204_s0, %s639_s19  ;;  %s260_s30 = scalar_lea.vmem [#allocation2], %s638_s18 }
  0x23   : > { %s268_s27 = sshll.u32 %s260_s30, 4  ;;  %s266_s7 = sshll.u32 %s264_s26, 4  ;;  %s269_s27 = int_to_ptr.vmem [resolvable:$true] %s268_s27  ;;  %s267_s7 = int_to_ptr.hbm [resolvable:$true] %s266_s7 }
  0x24   : > { %p1116_p7 = pnand %p697_p2, %p1089_p11  ;;  %s257_s10 = scalar_lea.sflag [#allocation3], %s256_s15 }
  0x25   : > { %s867_s12 = sshra.s32 %s267_s7, 4  ;;  %s874_s20 = scalar_lea.hbm %s1204_s0, 16  ;;  %s868_s12 = int_to_ptr.hbm [resolvable:$true] %s867_s12 }
  0x26   : > { %s869_s1 = scalar_lea.hbm %s868_s12, 8  ;;  %p871_p9 = pneg %p1116_p7 }
  0x27   : > { %p870_p8 = scmp.ne.s32.totalorder %s868_s12, %s869_s1  ;;  %p875_p11 = scmp.lt.s32.totalorder %s868_s12, %s1204_s0 }
  0x28   : > { %p876_p0 = scmp.lt.s32.totalorder %s874_s20, %s869_s1 }
  0x29   : > { %p872_p10 = pnand %p871_p9, %p870_p8 }
  0x2a   : > { %p877_p2 = por %p876_p0, %p875_p11 }
  0x2b   : > { %p873_p13 = pneg %p872_p10 }
  0x2d   : > { %p878_p5 = pnand %p877_p2, %p873_p13 }
  0x2f   : > { %881 = shalt.err (!%p878_p5)
}
  0x30   : > { %688 = dma.hbm_to_vmem [thread:$0]  (!%p1116_p7), %s267_s7, 128, %s269_s27, %s257_s10  }
  0x31   : > { %277 = sbr.rel (%p1044_p3) target bundleno = 1024 (0x400), region = 44  ;;  %s1133_s15 = sand.u32 (!%p1044_p3), 1, %s963_s22  }
  0x32   : > { %s641_s26 = sshll.u32 (!%p1044_p3), %s1133_s15, 3  ;;  %s280_s30 = scalar_lea.sflag (!%p1044_p3), [#allocation3], %s1133_s15 }
  0x33   : > { %s1139_s1 = scalar_lea.vmem (!%p1044_p3), [#allocation2], %s641_s26 }
  0x36   : > { %942 = dma.done.wait (%p1095_p12), %s280_s30, 128  }
  0x37   : > { %944 = vsyncadd (%p1095_p12), %s280_s30, 4294967168 }
  0x38   : > { %946 = dma.done.wait (%p45_p1), [#allocation6], 4096  }
  0x39   : > { %948 = vsyncadd (%p45_p1), [#allocation6], 4294963200 }
  0x3a   : > { %950 = dma.done.wait (%p45_p1), [#allocation9], 2176  }
  0x3b   : > { %952 = vsyncadd (%p45_p1), [#allocation9], 4294965120  ;;  %v355_v0 = vld [vmem:[#allocation5 + $0x78] sm:$0xff]  ;;  %v354_v1 = vld [vmem:[#allocation5 + $0x70] sm:$0xff]  ;;  %v335_v22 = vlaneseq  ;;  %v979_v26 = vmov 0.0   ;;  %s649_s29 = sshll.u32 %s1039_s28, 3 }
  0x3c   : > { %357 = vmatpush.msra.mxu0 %v355_v0  ;;  %v353_v2 = vld [vmem:[#allocation5 + $0x68] sm:$0xff]  ;;  %v352_v3 = vld [vmem:[#allocation5 + $0x60] sm:$0xff]  ;;  %v351_v4 = vld [vmem:[#allocation5 + $0x58] sm:$0xff]  ;;  %s518_s7 = scalar_lea.hbm %s1210_s6, %s649_s29  ;;  %s332_s12 = scalar_lea.vmem [#allocation11], %s641_s26 }
  0x3d   : > { %v350_v5 = vld [vmem:[#allocation5 + $0x50] sm:$0xff]  ;;  %v349_v6 = vld [vmem:[#allocation5 + $0x48] sm:$0xff]  ;;  %v348_v7 = vld [vmem:[#allocation5 + $0x40] sm:$0xff]  ;;  %v336_v23 = vand.u32 127, %v335_v22  ;;  %s520_s18 = sshll.u32 %s332_s12, 4  ;;  %s522_s19 = sshll.u32 %s518_s7, 4  ;;  %s521_s18 = int_to_ptr.vmem [resolvable:$true] %s520_s18  ;;  %s523_s19 = int_to_ptr.hbm [resolvable:$true] %s522_s19 }
  0x3e   : > { %358 = vmatpush.msra.mxu0 %v354_v1  ;;  %v347_v8 = vld [vmem:[#allocation5 + $0x38] sm:$0xff]  ;;  %v346_v9 = vld [vmem:[#allocation5 + $0x30] sm:$0xff]  ;;  %v345_v10 = vld [vmem:[#allocation5 + $0x28] sm:$0xff]  ;;  %s508_s20 = scalar_lea.sflag [#allocation4], %s1133_s15  ;;  %s911_s28 = sshra.s32 %s523_s19, 4  ;;  %s912_s28 = int_to_ptr.hbm [resolvable:$true] %s911_s28 }
  0x3f   : > { %v344_v11 = vld [vmem:[#allocation5 + $0x20] sm:$0xff]  ;;  %v343_v12 = vld [vmem:[#allocation5 + $0x18] sm:$0xff]  ;;  %v342_v13 = vld [vmem:[#allocation5 + $0x10] sm:$0xff]  ;;  %vm337_vm0 = vcmp.lt.s32.totalorder %v336_v23, 32  ;;  %s913_s25 = scalar_lea.hbm %s912_s28, 8  ;;  %p918_p12 = scmp.lt.s32.totalorder %s912_s28, %s1210_s6 }
  0x40   : > { %359 = vmatpush.msra.mxu0 %v353_v2  ;;  %v341_v14 = vld [vmem:[#allocation5 + $0x8] sm:$0xff]  ;;  %v340_v15 = vld [vmem:[#allocation5] sm:$0xff]  ;;  %v333_v16 = vld [vmem:[%s1139_s1] sm:$0xff]  ;;  %v1157_v27 = vsel %vm337_vm0, 1.0, %v979_v26  ;;  %p914_p1 = scmp.ne.s32.totalorder %s912_s28, %s913_s25  ;;  %s917_s1 = scalar_lea.hbm %s1210_s6, 16 }
  0x41   : > { %v1154_v17 = vld [vmem:[#allocation10] sm:$0xff]  ;;  %v418_v21 = vld [vmem:[#allocation7 + $0x78] sm:$0xff]  ;;  %v417_v31 = vld [vmem:[#allocation7 + $0x70] sm:$0xff]  ;;  %p919_p7 = scmp.lt.s32.totalorder %s917_s1, %s913_s25 }
  0x42   : > { %360 = vmatpush.msra.mxu0 %v352_v3  ;;  %v356_v18 = vperm.slane %v1154_v17, 0  ;;  %420 = vmatpush.msra.mxu1 %v418_v21  ;;  %v416_v32 = vld [vmem:[#allocation7 + $0x68] sm:$0xff]  ;;  %v415_v33 = vld [vmem:[#allocation7 + $0x60] sm:$0xff]  ;;  %v414_v34 = vld [vmem:[#allocation7 + $0x58] sm:$0xff]  ;;  %v398_v55 = vperm.slane %v1154_v17, 1  ;;  %v400_v58 = vperm.slane %v1154_v17, 2  ;;  %p915_p3 = pnand %p914_p1, %p1102_p4 }
  0x43   : > { %v413_v35 = vld [vmem:[#allocation7 + $0x50] sm:$0xff]  ;;  %v412_v36 = vld [vmem:[#allocation7 + $0x48] sm:$0xff]  ;;  %v411_v37 = vld [vmem:[#allocation7 + $0x40] sm:$0xff]  ;;  %v419_v62 = vperm.slane %v1154_v17, 3  ;;  %p920_p8 = por %p919_p7, %p918_p12 }
  0x44   : > { %361 = vmatpush.msra.mxu0 %v351_v4  ;;  %421 = vmatpush.msra.mxu1 %v417_v31  ;;  %v410_v38 = vld [vmem:[#allocation7 + $0x38] sm:$0xff]  ;;  %v409_v39 = vld [vmem:[#allocation7 + $0x30] sm:$0xff]  ;;  %v408_v40 = vld [vmem:[#allocation7 + $0x28] sm:$0xff]  ;;  %p916_p5 = pneg %p915_p3 }
  0x45   : > { %v407_v41 = vld [vmem:[#allocation7 + $0x20] sm:$0xff]  ;;  %v406_v42 = vld [vmem:[#allocation7 + $0x18] sm:$0xff]  ;;  %v405_v43 = vld [vmem:[#allocation7 + $0x10] sm:$0xff] }
  0x46   : > { %362 = vmatpush.msra.mxu0 %v350_v5  ;;  %422 = vmatpush.msra.mxu1 %v416_v32  ;;  %v404_v44 = vld [vmem:[#allocation7 + $0x8] sm:$0xff]  ;;  %v403_v45 = vld [vmem:[#allocation7] sm:$0xff]  ;;  %v481_v1 = vld [vmem:[#allocation8 + $0x78] sm:$0xff]  ;;  %v461_v32 = vperm.slane %v1154_v17, 4  ;;  %p921_p9 = pnand %p920_p8, %p916_p5 }
  0x47   : > { %486 = vmatpush.msra.mxu2 %v481_v1  ;;  %v467_v21 = vld [vmem:[#allocation8 + $0x8] sm:$0xff]  ;;  %v466_v22 = vld [vmem:[#allocation8] sm:$0xff] }
  0x48   : > { %363 = vmatpush.msra.mxu0 %v349_v6  ;;  %423 = vmatpush.msra.mxu1 %v415_v33 }
  0x4a   : > { %364 = vmatpush.msra.mxu0 %v348_v7  ;;  %424 = vmatpush.msra.mxu1 %v414_v34  ;;  %v480_v7 = vld [vmem:[#allocation8 + $0x70] sm:$0xff] }
  0x4b   : > { %487 = vmatpush.msra.mxu2 %v480_v7 }
  0x4c   : > { %365 = vmatpush.msra.mxu0 %v347_v8  ;;  %425 = vmatpush.msra.mxu1 %v413_v35  ;;  %v479_v8 = vld [vmem:[#allocation8 + $0x68] sm:$0xff]  ;;  %v463_v35 = vperm.slane %v1154_v17, 5 }
  0x4d   : > { %488 = vmatpush.msra.mxu2 %v479_v8 }
  0x4e   : > { %366 = vmatpush.msra.mxu0 %v346_v9  ;;  %426 = vmatpush.msra.mxu1 %v412_v36  ;;  %v478_v9 = vld [vmem:[#allocation8 + $0x60] sm:$0xff] }
  0x4f   : > { %489 = vmatpush.msra.mxu2 %v478_v9 }
  0x50   : > { %367 = vmatpush.msra.mxu0 %v345_v10  ;;  %427 = vmatpush.msra.mxu1 %v411_v37  ;;  %v477_v10 = vld [vmem:[#allocation8 + $0x58] sm:$0xff] }
  0x51   : > { %490 = vmatpush.msra.mxu2 %v477_v10 }
  0x52   : > { %368 = vmatpush.msra.mxu0 %v344_v11  ;;  %428 = vmatpush.msra.mxu1 %v410_v38  ;;  %v476_v11 = vld [vmem:[#allocation8 + $0x50] sm:$0xff] }
  0x53   : > { %491 = vmatpush.msra.mxu2 %v476_v11 }
  0x54   : > { %369 = vmatpush.msra.mxu0 %v343_v12  ;;  %429 = vmatpush.msra.mxu1 %v409_v39  ;;  %v475_v12 = vld [vmem:[#allocation8 + $0x48] sm:$0xff]  ;;  %v742_v39 = vld [vmem:[%s1209_s5] ss:$0 sm:$0xff] }
  0x55   : > { %492 = vmatpush.msra.mxu2 %v475_v12 }
  0x56   : > { %370 = vmatpush.msra.mxu0 %v342_v13  ;;  %430 = vmatpush.msra.mxu1 %v408_v40  ;;  %v474_v13 = vld [vmem:[#allocation8 + $0x40] sm:$0xff] }
  0x57   : > { %493 = vmatpush.msra.mxu2 %v474_v13 }
  0x58   : > { %371 = vmatpush.msra.mxu0 %v341_v14  ;;  %431 = vmatpush.msra.mxu1 %v407_v41  ;;  %v473_v14 = vld [vmem:[#allocation8 + $0x38] sm:$0xff] }
  0x59   : > { %494 = vmatpush.msra.mxu2 %v473_v14 }
  0x5a   : > { %372 = vmatpush.msra.mxu0 %v340_v15  ;;  %432 = vmatpush.msra.mxu1 %v406_v42  ;;  %v472_v15 = vld [vmem:[#allocation8 + $0x30] sm:$0xff] }
  0x5b   : > { %373 = vmatmul.f32.vlgmr.msra.gmra.mxu0 %v333_v16  ;;  %495 = vmatpush.msra.mxu2 %v472_v15  ;;  %v471_v16 = vld [vmem:[#allocation8 + $0x28] sm:$0xff] }
  0x5c   : > { %433 = vmatpush.msra.mxu1 %v405_v43 }
  0x5d   : > { %496 = vmatpush.msra.mxu2 %v471_v16 }
  0x5e   : > { %434 = vmatpush.msra.mxu1 %v404_v44 }
  0x60   : > { %435 = vmatpush.msra.mxu1 %v403_v45 }
  0xd8   : > { %v374_v19 = vpop.f32.mrf.mxu0 }
  0xd9   : > { %v375_v20 = vadd.f32 %v374_v19, %v356_v18  ;;  %v470_v18 = vld [vmem:[#allocation8 + $0x20] sm:$0xff]  ;;  %v469_v19 = vld [vmem:[#allocation8 + $0x18] sm:$0xff] }
  0xda   : > { %497 = vmatpush.msra.mxu2 %v470_v18 }
  0xdb   : > { %377 = vadd.xlane.f32.xlu0 %v375_v20 }
  0xdc   : > { %498 = vmatpush.msra.mxu2 %v469_v19 }
 0x14e   : > { %v378_v24 = vpop.xlane.xlu0 %377 }
 0x14f   : > { %v379_v25 = vmul.f32 0.03125, %v378_v24 }
 0x151   : > { %v380_v28 = vsub.f32 %v375_v20, %v379_v25  ;;  %v468_v20 = vld [vmem:[#allocation8 + $0x10] sm:$0xff] }
 0x152   : > { %499 = vmatpush.msra.mxu2 %v468_v20 }
 0x153   : > { %v381_v29 = vmul.f32 %v1157_v27, %v380_v28 }
 0x154   : > { %500 = vmatpush.msra.mxu2 %v467_v21 }
 0x155   : > { %v382_v30 = vmul.f32 %v381_v29, %v381_v29 }
 0x156   : > { %501 = vmatpush.msra.mxu2 %v466_v22 }
 0x157   : > { %383 = vadd.xlane.f32.xlu0 %v382_v30 }
 0x1ca   : > { %v384_v46 = vpop.xlane.xlu0 %383 }
 0x1cb   : > { %v385_v47 = vmul.f32 0.03125, %v384_v46 }
 0x1cd   : > { %v386_v48 = vadd.f32 1e-05, %v385_v47 }
 0x1cf   : > { %743 = vrsqrt.f32 %v386_v48  ;;  %vm393_vm2 = vweird.f32 %v386_v48 }
 0x1d5   : > { %v744_v49 = vpop.eup %743 }
 0x1d6   : > { %v388_v50 = vmul.f32 %v744_v49, %v386_v48  ;;  %vm394_vm1 = vweird.f32 %v744_v49 }
 0x1d7   : > { %vm395_vm3 = vmor %vm393_vm2, %vm394_vm1 }
 0x1d8   : > { %v389_v51 = vmul.f32 %v744_v49, %v388_v50 }
 0x1da   : > { %v390_v52 = vmul.f32 0.5, %v389_v51 }
 0x1dc   : > { %v391_v53 = vsub.f32 1.5, %v390_v52 }
 0x1de   : > { %v392_v54 = vmul.f32 %v744_v49, %v391_v53 }
 0x1e0   : > { %v396_v56 = vsel %vm395_vm3, %v744_v49, %v392_v54 }
 0x1e1   : > { %v397_v57 = vmul.f32 %v396_v56, %v381_v29 }
 0x1e3   : > { %v399_v59 = vmul.f32 %v398_v55, %v397_v57 }
 0x1e5   : > { %v401_v60 = vadd.f32 %v400_v58, %v399_v59 }
 0x1e7   : > { %v402_v61 = vmax.f32 %v401_v60, 0.0 }
 0x1e9   : > { %436 = vmatmul.f32.vlgmr.msra.gmra.mxu1 %v402_v61 }
 0x266   : > { %v437_v63 = vpop.f32.mrf.mxu1 }
 0x267   : > { %v438_v0 = vadd.f32 %v437_v63, %v419_v62 }
 0x269   : > { %440 = vadd.xlane.f32.xlu1 %v438_v0 }
 0x2dc   : > { %v441_v2 = vpop.xlane.xlu1 %440 }
 0x2dd   : > { %v442_v3 = vmul.f32 0.03125, %v441_v2 }
 0x2df   : > { %v443_v4 = vsub.f32 %v438_v0, %v442_v3 }
 0x2e1   : > { %v444_v5 = vmul.f32 %v1157_v27, %v443_v4 }
 0x2e3   : > { %v445_v6 = vmul.f32 %v444_v5, %v444_v5 }
 0x2e5   : > { %446 = vadd.xlane.f32.xlu1 %v445_v6 }
 0x358   : > { %v447_v23 = vpop.xlane.xlu1 %446 }
 0x359   : > { %v448_v24 = vmul.f32 0.03125, %v447_v23 }
 0x35b   : > { %v449_v25 = vadd.f32 1e-05, %v448_v24 }
 0x35d   : > { %745 = vrsqrt.f32 %v449_v25  ;;  %vm456_vm5 = vweird.f32 %v449_v25 }
 0x363   : > { %v746_v26 = vpop.eup %745 }
 0x364   : > { %v451_v27 = vmul.f32 %v746_v26, %v449_v25  ;;  %vm457_vm4 = vweird.f32 %v746_v26 }
 0x365   : > { %vm458_vm6 = vmor %vm456_vm5, %vm457_vm4 }
 0x366   : > { %v452_v28 = vmul.f32 %v746_v26, %v451_v27 }
 0x368   : > { %v453_v29 = vmul.f32 0.5, %v452_v28 }
 0x36a   : > { %v454_v30 = vsub.f32 1.5, %v453_v29 }
 0x36c   : > { %v455_v31 = vmul.f32 %v746_v26, %v454_v30 }
 0x36e   : > { %v459_v33 = vsel %vm458_vm6, %v746_v26, %v455_v31 }
 0x36f   : > { %v460_v34 = vmul.f32 %v459_v33, %v444_v5 }
 0x371   : > { %v462_v36 = vmul.f32 %v461_v32, %v460_v34 }
 0x373   : > { %v464_v37 = vadd.f32 %v463_v35, %v462_v36 }
 0x375   : > { %v465_v38 = vmax.f32 %v464_v37, 0.0 }
 0x377   : > { %502 = vmatmul.f32.vlgmr.msra.gmra.mxu2 %v465_v38 }
 0x3fa   : > { %v503_v17 = vpop.f32.mrf.mxu2 }
 0x3fb   : > { %v504_v40 = vadd.f32 %v742_v39, %v503_v17 }
 0x3fd   : > { %506 = vst [vmem:[%s332_s12] sm:$0xff] %v504_v40 }
 0x3fe   : > { %924 = shalt.err (!%p921_p9)
}
 0x3ff   : > { %670 = dma.vmem_to_hbm [thread:$0]  (%p1102_p4), %s521_s18, 128, %s523_s19, %s508_s20  }
 0x400 PF: > { %s534_s15 = sand.u32 1, %s959_s21   ;;  %p1220_p10 = scmp.ge.s32.totalorder %s971_s24, 2 }
 0x401   : > { %s535_s11 = scalar_lea.sflag [#allocation4], %s534_s15 }
 0x402   : > { %p690_p13 = pnand %p1220_p10, %p1106_p6 }
 0x404   : > { %p691_p11 = pneg %p690_p13 }
 0x406   : > { %954 = dma.done.wait (%p691_p11), %s535_s11, 128  }
 0x407   : > { %956 = vsyncadd (%p691_p11), %s535_s11, 4294967168  ;;  %p21_p0 = scmp.ge.s32.totalorder %s1076_s9, 4   ;;  %s1221_s21 = smov %s963_s22 }
 0x408   : > { %s1222_s22 = smov %s967_s23  ;;  %s1223_s23 = smov %s1087_s13 }
 0x409   : > { %s1224_s24 = smov %s1076_s9  ;;  %23 = sbr.rel (!%p21_p0) target bundleno = 9 (0x9), region = 105 }
 0x40e   :  { %541 = vsyncpa [#allocation3], 1 }
 0x40f   :  { %543 = vsyncpa [#allocation3 + $0x1], 1 }
 0x410   :  { %544 = vsyncpa [#allocation6], 1 }
 0x411   :  { %545 = vsyncpa [#allocation9], 1 }
 0x412   :  { %546 = vsyncpa [#allocation4], 1 }
 0x413   :  { %548 = vsyncpa [#allocation4 + $0x1], 1 }

</bundles_post_ra>
